<compile_context>
chip_gen: v6e
topology: v6e:2x2x1
jax: 0.10.0
libtpu: 0.0.40
codegen_flags: <defaults>
</compile_context>

<pallas_src>
import functools

import jax
import jax.numpy as jnp
from jax import lax
from jax.experimental import pallas as pl
from jax.experimental.pallas import tpu as pltpu

KERNEL_MUL = 2.0
KERNEL_NUM = 5


def _multi_bandwidth_ksum(l2, neg_inv_bw_max, kernel_mul, kernel_num):
    """sum_i exp(-l2 / (bw * mul**i)), given neg_inv_bw_max = -1/(bw*mul**(num-1))."""
    if kernel_mul == 2.0:
        # exp(-l2 / bw_i) = e0 ** (2 ** (num-1-i)); one EUP exp, rest VPU muls.
        e = jnp.exp(l2 * neg_inv_bw_max)
        ksum = e
        for _ in range(kernel_num - 1):
            e = e * e
            ksum = ksum + e
        return ksum
    # General fallback: one exp per bandwidth (still only one N x N scale each).
    ksum = None
    for i in range(kernel_num):
        scale = kernel_mul ** (kernel_num - 1 - i)
        term = jnp.exp(l2 * (neg_inv_bw_max * scale))
        ksum = term if ksum is None else ksum + term
    return ksum


def _mmd_tile_kernel(bw_ref, sr_ref, tr_ref, sc_ref, tc_ref,
                     sqs_r_ref, sqt_r_ref, sqs_c_ref, sqt_c_ref,
                     out_ref, *, kernel_mul, kernel_num):
    i = pl.program_id(0)
    j = pl.program_id(1)

    @pl.when(jnp.logical_and(i == 0, j == 0))
    def _init():
        out_ref[...] = jnp.zeros_like(out_ref)

    neg_inv_bw_max = bw_ref[0]  # scalar from SMEM

    # Fold the -2 of ||a-b||^2 = |a|^2 + |b|^2 - 2<a,b> into the row operands
    # (each reused by two matmuls below).
    s_rows = sr_ref[...].astype(jnp.float32) * (-2.0)   # (TM, D)
    t_rows = tr_ref[...].astype(jnp.float32) * (-2.0)   # (TM, D)
    s_cols = sc_ref[...].astype(jnp.float32)             # (TN, D)
    t_cols = tc_ref[...].astype(jnp.float32)             # (TN, D)

    sq_s_r = sqs_r_ref[...]   # (TM, 1)
    sq_t_r = sqt_r_ref[...]   # (TM, 1)
    sq_s_c = sqs_c_ref[...]   # (1, TN)
    sq_t_c = sqt_c_ref[...]   # (1, TN)

    # Gram tiles, contracting dim 1 of both operands (no explicit transpose).
    dn = (((1,), (1,)), ((), ()))
    g_ss = lax.dot_general(s_rows, s_cols, dn, preferred_element_type=jnp.float32)
    g_tt = lax.dot_general(t_rows, t_cols, dn, preferred_element_type=jnp.float32)
    g_st = lax.dot_general(s_rows, t_cols, dn, preferred_element_type=jnp.float32)

    l2_ss = jnp.maximum(sq_s_r + sq_s_c + g_ss, 0.0)
    l2_tt = jnp.maximum(sq_t_r + sq_t_c + g_tt, 0.0)
    l2_st = jnp.maximum(sq_s_r + sq_t_c + g_st, 0.0)

    k_ss = _multi_bandwidth_ksum(l2_ss, neg_inv_bw_max, kernel_mul, kernel_num)
    k_tt = _multi_bandwidth_ksum(l2_tt, neg_inv_bw_max, kernel_mul, kernel_num)
    k_st = _multi_bandwidth_ksum(l2_st, neg_inv_bw_max, kernel_mul, kernel_num)

    # loss numerator contribution: sum(XX) + sum(YY) - sum(XY) - sum(YX)
    #                            = sum(XX) + sum(YY) - 2*sum(XY)   (symmetry)
    partial = jnp.sum(k_ss + k_tt - 2.0 * k_st, keepdims=True)  # (1, 1)
    out_ref[...] += partial


def _choose_tile(b):
    if b <= 512:
        return b                      # single tile along that axis (== full dim)
    for t in (512, 256, 128):
        if b % t == 0:
            return t
    return b                          # fallback: one big tile


def mmd_loss(source, target, kernel_mul=KERNEL_MUL, kernel_num=KERNEL_NUM):
    """source, target: (B, D) arrays with the same shape."""
    assert source.shape == target.shape
    b, d = source.shape
    n = 2 * b

    # O(N*D) reductions in plain JAX (fused by XLA): row norms + analytic
    # bandwidth.  sum_ij ||xi - xj||^2 = 2*N*sum_i||xi||^2 - 2*||sum_i xi||^2.
    src_f = source.astype(jnp.float32)
    tgt_f = target.astype(jnp.float32)
    sq_s = jnp.sum(jnp.square(src_f), axis=1)            # (B,)
    sq_t = jnp.sum(jnp.square(tgt_f), axis=1)            # (B,)
    col_sum = jnp.sum(src_f, axis=0) + jnp.sum(tgt_f, axis=0)   # (D,)
    sum_sq = jnp.sum(sq_s) + jnp.sum(sq_t)
    sum_l2 = 2.0 * n * sum_sq - 2.0 * jnp.sum(jnp.square(col_sum))

    bandwidth = sum_l2 / jnp.float32(n * n - n)
    bandwidth = bandwidth / jnp.float32(kernel_mul ** (kernel_num // 2))
    neg_inv_bw_max = -1.0 / (bandwidth * jnp.float32(kernel_mul ** (kernel_num - 1)))
    neg_inv_bw_max = jnp.reshape(neg_inv_bw_max, (1,)).astype(jnp.float32)

    t_blk = _choose_tile(b)
    g = b // t_blk

    row_spec = pl.BlockSpec((t_blk, d), lambda i, j: (i, 0))
    col_spec = pl.BlockSpec((t_blk, d), lambda i, j: (j, 0))
    sq_row_spec = pl.BlockSpec((t_blk, 1), lambda i, j: (i, 0))
    sq_col_spec = pl.BlockSpec((1, t_blk), lambda i, j: (0, j))

    kernel = functools.partial(
        _mmd_tile_kernel, kernel_mul=kernel_mul, kernel_num=kernel_num)

    out = pl.pallas_call(
        kernel,
        out_shape=jax.ShapeDtypeStruct((1, 1), jnp.float32),
        grid_spec=pltpu.PrefetchScalarGridSpec(
            num_scalar_prefetch=0,
            grid=(g, g),
            in_specs=[
                pl.BlockSpec(memory_space=pltpu.SMEM),    # neg_inv_bw_max scalar
                row_spec, row_spec,                       # source rows, target rows
                col_spec, col_spec,                       # source cols, target cols
                sq_row_spec, sq_row_spec,                 # ||s||^2 (TM,1), ||t||^2 (TM,1)
                sq_col_spec, sq_col_spec,                 # ||s||^2 (1,TN), ||t||^2 (1,TN)
            ],
            out_specs=pl.BlockSpec((1, 1), lambda i, j: (0, 0)),
        ),
        compiler_params=pltpu.CompilerParams(
            dimension_semantics=("arbitrary", "arbitrary")),
    )(neg_inv_bw_max,
      source, target, source, target,
      sq_s.reshape(b, 1), sq_t.reshape(b, 1),
      sq_s.reshape(1, b), sq_t.reshape(1, b))

    return out[0, 0] / jnp.float32(b * b)


def mmd_loss_ref(source, target, kernel_mul=KERNEL_MUL, kernel_num=KERNEL_NUM):
    # Pure-JAX reference mirroring the PyTorch code path.
    total = jnp.concatenate([source, target], axis=0).astype(jnp.float32)
    n = total.shape[0]
    diff = total[None, :, :] - total[:, None, :]
    l2 = jnp.sum(diff * diff, axis=2)
    bw = jnp.sum(l2) / (n * n - n)
    bw = bw / (kernel_mul ** (kernel_num // 2))
    kern = sum(jnp.exp(-l2 / (bw * kernel_mul ** i)) for i in range(kernel_num))
    b = n // 2
    xx = kern[:b, :b]
    yy = kern[b:, b:]
    xy = kern[:b, b:]
    yx = kern[b:, :b]
    return jnp.mean(xx + yy - xy - yx)


if __name__ == "__main__":
    key = jax.random.PRNGKey(0)
    k1, k2 = jax.random.split(key)
    B, D = 8, 32
    source = jax.random.normal(k1, (B, D), dtype=jnp.float32)
    target = jax.random.normal(k2, (B, D), dtype=jnp.float32) + 0.5

    loss = jax.block_until_ready(mmd_loss(source, target))
    ref = jax.block_until_ready(mmd_loss_ref(source, target))

    assert jnp.isfinite(loss), "non-finite loss"
    assert jnp.allclose(loss, ref, rtol=1e-4, atol=1e-5), (loss, ref)
    print("KERNEL_OK")
</pallas_src>

<mosaic_0001>
module attributes {stable_mosaic.version = 11 : i64} {
  func.func @_mmd_tile_kernel(%arg0: i32, %arg1: i32, %arg2: memref<1xf32, #tpu.memory_space<smem>>, %arg3: memref<8x32xf32, #tpu.memory_space<vmem>>, %arg4: memref<8x32xf32, #tpu.memory_space<vmem>>, %arg5: memref<8x32xf32, #tpu.memory_space<vmem>>, %arg6: memref<8x32xf32, #tpu.memory_space<vmem>>, %arg7: memref<8x1xf32, #tpu.memory_space<vmem>>, %arg8: memref<8x1xf32, #tpu.memory_space<vmem>>, %arg9: memref<1x8xf32, #tpu.memory_space<vmem>>, %arg10: memref<1x8xf32, #tpu.memory_space<vmem>>, %arg11: memref<1x1xf32, #tpu.memory_space<vmem>>) attributes {dimension_semantics = [#tpu.dimension_semantics<arbitrary>, #tpu.dimension_semantics<arbitrary>], iteration_bounds = array<i64: 1, 1>, scalar_prefetch = 0 : i64, scratch_operands = 0 : i64, tpu.core_type = #tpu.core_type<tc>, window_params = [{transform_indices = @transform_0, window_bounds = array<i64: 1>}, {transform_indices = @transform_1, window_bounds = array<i64: 8, 32>}, {transform_indices = @transform_2, window_bounds = array<i64: 8, 32>}, {transform_indices = @transform_3, window_bounds = array<i64: 8, 32>}, {transform_indices = @transform_4, window_bounds = array<i64: 8, 32>}, {transform_indices = @transform_5, window_bounds = array<i64: 8, 1>}, {transform_indices = @transform_6, window_bounds = array<i64: 8, 1>}, {transform_indices = @transform_7, window_bounds = array<i64: 1, 8>}, {transform_indices = @transform_8, window_bounds = array<i64: 1, 8>}, {pipeline_mode = #tpu.pipeline_mode<synchronous>, transform_indices = @transform_9, window_bounds = array<i64: 1, 1>}]} {
    %c0_i32 = arith.constant 0 : i32
    %0 = arith.cmpi eq, %arg0, %c0_i32 : i32
    %c0_i32_0 = arith.constant 0 : i32
    %1 = arith.cmpi eq, %arg1, %c0_i32_0 : i32
    %2 = arith.andi %0, %1 : i1
    %3 = arith.extui %2 : i1 to i32
    %c0_i32_1 = arith.constant 0 : i32
    %4 = arith.cmpi ne, %3, %c0_i32_1 : i32
    scf.if %4 {
      %cst_31 = arith.constant 0.000000e+00 : f32
      %84 = vector.broadcast %cst_31 : f32 to vector<1x1xf32>
      %c0_32 = arith.constant 0 : index
      %c0_33 = arith.constant 0 : index
      %85 = vector.load %arg11[%c0_32, %c0_33] : memref<1x1xf32, #tpu.memory_space<vmem>>, vector<1x1xf32>
      tpu.vector_store %arg11[%c0_32, %c0_33], %84 {strides = array<i32>} : memref<1x1xf32, #tpu.memory_space<vmem>>, vector<1x1xf32>,
    } else {
    }
    %c0 = arith.constant 0 : index
    %5 = memref.load %arg2[%c0] : memref<1xf32, #tpu.memory_space<smem>>
    %c0_2 = arith.constant 0 : index
    %c0_3 = arith.constant 0 : index
    %6 = vector.load %arg3[%c0_2, %c0_3] : memref<8x32xf32, #tpu.memory_space<vmem>>, vector<8x32xf32>
    %cst = arith.constant -2.000000e+00 : f32
    %7 = vector.broadcast %cst : f32 to vector<8x32xf32>
    %8 = arith.mulf %6, %7 : vector<8x32xf32>
    %c0_4 = arith.constant 0 : index
    %c0_5 = arith.constant 0 : index
    %9 = vector.load %arg4[%c0_4, %c0_5] : memref<8x32xf32, #tpu.memory_space<vmem>>, vector<8x32xf32>
    %cst_6 = arith.constant -2.000000e+00 : f32
    %10 = vector.broadcast %cst_6 : f32 to vector<8x32xf32>
    %11 = arith.mulf %9, %10 : vector<8x32xf32>
    %c0_7 = arith.constant 0 : index
    %c0_8 = arith.constant 0 : index
    %12 = vector.load %arg5[%c0_7, %c0_8] : memref<8x32xf32, #tpu.memory_space<vmem>>, vector<8x32xf32>
    %c0_9 = arith.constant 0 : index
    %c0_10 = arith.constant 0 : index
    %13 = vector.load %arg6[%c0_9, %c0_10] : memref<8x32xf32, #tpu.memory_space<vmem>>, vector<8x32xf32>
    %c0_11 = arith.constant 0 : index
    %c0_12 = arith.constant 0 : index
    %14 = vector.load %arg7[%c0_11, %c0_12] : memref<8x1xf32, #tpu.memory_space<vmem>>, vector<8x1xf32>
    %c0_13 = arith.constant 0 : index
    %c0_14 = arith.constant 0 : index
    %15 = vector.load %arg8[%c0_13, %c0_14] : memref<8x1xf32, #tpu.memory_space<vmem>>, vector<8x1xf32>
    %c0_15 = arith.constant 0 : index
    %c0_16 = arith.constant 0 : index
    %16 = vector.load %arg9[%c0_15, %c0_16] : memref<1x8xf32, #tpu.memory_space<vmem>>, vector<1x8xf32>
    %c0_17 = arith.constant 0 : index
    %c0_18 = arith.constant 0 : index
    %17 = vector.load %arg10[%c0_17, %c0_18] : memref<1x8xf32, #tpu.memory_space<vmem>>, vector<1x8xf32>
    %cst_19 = arith.constant dense<0.000000e+00> : vector<8x8xf32>
    %18 = tpu.matmul %8, %12, %cst_19 {dimension_numbers = #tpu.dot_dimension_numbers<[1], [1], [0], [0], [0, 0, 1, 0], [], []>} : vector<8x32xf32>, vector<8x32xf32>, vector<8x8xf32> -> vector<8x8xf32>
    %cst_20 = arith.constant dense<0.000000e+00> : vector<8x8xf32>
    %19 = tpu.matmul %11, %13, %cst_20 {dimension_numbers = #tpu.dot_dimension_numbers<[1], [1], [0], [0], [0, 0, 1, 0], [], []>} : vector<8x32xf32>, vector<8x32xf32>, vector<8x8xf32> -> vector<8x8xf32>
    %cst_21 = arith.constant dense<0.000000e+00> : vector<8x8xf32>
    %20 = tpu.matmul %8, %13, %cst_21 {dimension_numbers = #tpu.dot_dimension_numbers<[1], [1], [0], [0], [0, 0, 1, 0], [], []>} : vector<8x32xf32>, vector<8x32xf32>, vector<8x8xf32> -> vector<8x8xf32>
    %21 = vector.broadcast %14 : vector<8x1xf32> to vector<8x8xf32>
    %22 = vector.broadcast %16 : vector<1x8xf32> to vector<8x8xf32>
    %23 = arith.addf %21, %22 : vector<8x8xf32>
    %24 = arith.addf %23, %18 : vector<8x8xf32>
    %cst_22 = arith.constant 0.000000e+00 : f32
    %25 = vector.broadcast %cst_22 : f32 to vector<8x8xf32>
    %26 = arith.maximumf %24, %25 : vector<8x8xf32>
    %27 = vector.broadcast %15 : vector<8x1xf32> to vector<8x8xf32>
    %28 = vector.broadcast %17 : vector<1x8xf32> to vector<8x8xf32>
    %29 = arith.addf %27, %28 : vector<8x8xf32>
    %30 = arith.addf %29, %19 : vector<8x8xf32>
    %cst_23 = arith.constant 0.000000e+00 : f32
    %31 = vector.broadcast %cst_23 : f32 to vector<8x8xf32>
    %32 = arith.maximumf %30, %31 : vector<8x8xf32>
    %33 = vector.broadcast %14 : vector<8x1xf32> to vector<8x8xf32>
    %34 = vector.broadcast %17 : vector<1x8xf32> to vector<8x8xf32>
    %35 = arith.addf %33, %34 : vector<8x8xf32>
    %36 = arith.addf %35, %20 : vector<8x8xf32>
    %cst_24 = arith.constant 0.000000e+00 : f32
    %37 = vector.broadcast %cst_24 : f32 to vector<8x8xf32>
    %38 = arith.maximumf %36, %37 : vector<8x8xf32>
    %39 = vector.broadcast %5 : f32 to vector<8x8xf32>
    %40 = arith.mulf %26, %39 : vector<8x8xf32>
    %41 = math.exp %40 : vector<8x8xf32>
    %42 = arith.mulf %41, %41 : vector<8x8xf32>
    %43 = arith.addf %41, %42 : vector<8x8xf32>
    %44 = arith.mulf %42, %42 : vector<8x8xf32>
    %45 = arith.addf %43, %44 : vector<8x8xf32>
    %46 = arith.mulf %44, %44 : vector<8x8xf32>
    %47 = arith.addf %45, %46 : vector<8x8xf32>
    %48 = arith.mulf %46, %46 : vector<8x8xf32>
    %49 = arith.addf %47, %48 : vector<8x8xf32>
    %50 = vector.broadcast %5 : f32 to vector<8x8xf32>
    %51 = arith.mulf %32, %50 : vector<8x8xf32>
    %52 = math.exp %51 : vector<8x8xf32>
    %53 = arith.mulf %52, %52 : vector<8x8xf32>
    %54 = arith.addf %52, %53 : vector<8x8xf32>
    %55 = arith.mulf %53, %53 : vector<8x8xf32>
    %56 = arith.addf %54, %55 : vector<8x8xf32>
    %57 = arith.mulf %55, %55 : vector<8x8xf32>
    %58 = arith.addf %56, %57 : vector<8x8xf32>
    %59 = arith.mulf %57, %57 : vector<8x8xf32>
    %60 = arith.addf %58, %59 : vector<8x8xf32>
    %61 = vector.broadcast %5 : f32 to vector<8x8xf32>
    %62 = arith.mulf %38, %61 : vector<8x8xf32>
    %63 = math.exp %62 : vector<8x8xf32>
    %64 = arith.mulf %63, %63 : vector<8x8xf32>
    %65 = arith.addf %63, %64 : vector<8x8xf32>
    %66 = arith.mulf %64, %64 : vector<8x8xf32>
    %67 = arith.addf %65, %66 : vector<8x8xf32>
    %68 = arith.mulf %66, %66 : vector<8x8xf32>
    %69 = arith.addf %67, %68 : vector<8x8xf32>
    %70 = arith.mulf %68, %68 : vector<8x8xf32>
    %71 = arith.addf %69, %70 : vector<8x8xf32>
    %72 = arith.addf %49, %60 : vector<8x8xf32>
    %cst_25 = arith.constant 2.000000e+00 : f32
    %73 = vector.broadcast %cst_25 : f32 to vector<8x8xf32>
    %74 = arith.mulf %73, %71 : vector<8x8xf32>
    %75 = arith.subf %72, %74 : vector<8x8xf32>
    %76 = vector.shape_cast %75 : vector<8x8xf32> to vector<1x8x8xf32>
    %cst_26 = arith.constant dense<0.000000e+00> : vector<1xf32>
    %77 = vector.multi_reduction <add>, %76, %cst_26 [1, 2] : vector<1x8x8xf32> to vector<1xf32>
    %78 = vector.shape_cast %77 : vector<1xf32> to vector<1x1x1xf32>
    %79 = vector.extract %78[0, 0, 0] : f32 from vector<1x1x1xf32>
    %80 = vector.broadcast %79 : f32 to vector<1x1xf32>
    %c0_27 = arith.constant 0 : index
    %c0_28 = arith.constant 0 : index
    %81 = vector.load %arg11[%c0_27, %c0_28] : memref<1x1xf32, #tpu.memory_space<vmem>>, vector<1x1xf32>
    %82 = arith.addf %81, %80 : vector<1x1xf32>
    %c0_29 = arith.constant 0 : index
    %c0_30 = arith.constant 0 : index
    %83 = vector.load %arg11[%c0_29, %c0_30] : memref<1x1xf32, #tpu.memory_space<vmem>>, vector<1x1xf32>
    tpu.vector_store %arg11[%c0_29, %c0_30], %82 {strides = array<i32>} : memref<1x1xf32, #tpu.memory_space<vmem>>, vector<1x1xf32>,
    return
  }
  func.func @transform_0(%arg0: i32, %arg1: i32) -> i32 {
    %c0_i32 = arith.constant 0 : i32
    %c0_i32_0 = arith.constant 0 : i32
    return %c0_i32 : i32
  }
  func.func @transform_1(%arg0: i32, %arg1: i32) -> (i32, i32) {
    %c0_i32 = arith.constant 0 : i32
    %c0_i32_0 = arith.constant 0 : i32
    return %arg0, %c0_i32 : i32, i32
  }
  func.func @transform_2(%arg0: i32, %arg1: i32) -> (i32, i32) {
    %c0_i32 = arith.constant 0 : i32
    %c0_i32_0 = arith.constant 0 : i32
    return %arg0, %c0_i32 : i32, i32
  }
  func.func @transform_3(%arg0: i32, %arg1: i32) -> (i32, i32) {
    %c0_i32 = arith.constant 0 : i32
    %c0_i32_0 = arith.constant 0 : i32
    return %arg1, %c0_i32 : i32, i32
  }
  func.func @transform_4(%arg0: i32, %arg1: i32) -> (i32, i32) {
    %c0_i32 = arith.constant 0 : i32
    %c0_i32_0 = arith.constant 0 : i32
    return %arg1, %c0_i32 : i32, i32
  }
  func.func @transform_5(%arg0: i32, %arg1: i32) -> (i32, i32) {
    %c0_i32 = arith.constant 0 : i32
    %c0_i32_0 = arith.constant 0 : i32
    return %arg0, %c0_i32 : i32, i32
  }
  func.func @transform_6(%arg0: i32, %arg1: i32) -> (i32, i32) {
    %c0_i32 = arith.constant 0 : i32
    %c0_i32_0 = arith.constant 0 : i32
    return %arg0, %c0_i32 : i32, i32
  }
  func.func @transform_7(%arg0: i32, %arg1: i32) -> (i32, i32) {
    %c0_i32 = arith.constant 0 : i32
    %c0_i32_0 = arith.constant 0 : i32
    return %c0_i32, %arg1 : i32, i32
  }
  func.func @transform_8(%arg0: i32, %arg1: i32) -> (i32, i32) {
    %c0_i32 = arith.constant 0 : i32
    %c0_i32_0 = arith.constant 0 : i32
    return %c0_i32, %arg1 : i32, i32
  }
  func.func @transform_9(%arg0: i32, %arg1: i32) -> (i32, i32) {
    %c0_i32 = arith.constant 0 : i32
    %c0_i32_0 = arith.constant 0 : i32
    %c0_i32_1 = arith.constant 0 : i32
    return %c0_i32, %c0_i32_0 : i32, i32
  }
}

</mosaic_0001>

<bundles_post_ra>
// kernel: tpu_custom_call.1
= control target key start
LH: loop header
LB: loop body
LE: loop exit
PB: predicated region body
PF: predicated region fallthrough
CT: control target
= control target key end

     0   :  { %15 = vsyncpa [#allocation4], 0  ;;  %s577_s0 = inlined_call_operand.<no memory space> [shape: f32[1], index: 0, kind: input, shape index: {}]   ;;  %s578_s1 = inlined_call_operand.vmem [shape: f32[8,32], index: 1, kind: input, shape index: {}]   ;;  %s579_s2 = inlined_call_operand.vmem [shape: f32[8,32], index: 2, kind: input, shape index: {}]   ;;  %s580_s3 = inlined_call_operand.hbm [shape: f32[8,32], index: 3, kind: input, shape index: {}]   ;;  %s581_s4 = inlined_call_operand.vmem [shape: f32[8,32], index: 4, kind: input, shape index: {}]   ;;  %s582_s5 = inlined_call_operand.vmem [shape: f32[8,1], index: 5, kind: input, shape index: {}]   ;;  %s583_s6 = inlined_call_operand.vmem [shape: f32[8,1], index: 6, kind: input, shape index: {}]   ;;  %s584_s7 = inlined_call_operand.vmem [shape: f32[1,8], index: 7, kind: input, shape index: {}]   ;;  %s585_s8 = inlined_call_operand.vmem [shape: f32[1,8], index: 8, kind: input, shape index: {}]   ;;  %s586_s9 = inlined_call_operand.hbm [shape: f32[1,1], index: 9, kind: output, shape index: {}]  }
   0x1   :  { %16 = vsyncpa [#allocation5], 0  ;;  %s474_s30 = smov [#allocation3]  }
   0x2   :  { %s29_s10 = sshll.u32 %s474_s30, 4  ;;  %s30_s10 = int_to_ptr.vmem [resolvable:$true] %s29_s10 }
   0x3   :  { %s438_s11 = scalar_lea.vmem %s30_s10, 128  ;;  %p443_p1 = scmp.lt.s32.totalorder %s30_s10, %s30_s10 }
   0x4   :  { %p439_p0 = scmp.ne.s32.totalorder %s30_s10, %s438_s11  ;;  %p444_p2 = scmp.lt.s32.totalorder %s438_s11, %s438_s11 }
   0x6   :  { %p445_p3 = por %p444_p2, %p443_p1 }
   0x8   :  { %p446_p4 = pnand %p445_p3, %p439_p0 }
   0xa   :  { %449 = shalt.err (!%p446_p4)
}
   0xb   :  { %32 = dma.hbm_to_vmem [thread:$0]  %s580_s3, 128, %s30_s10, [#allocation4]  }
   0xc   :  { %470 = dma.done.wait [#allocation4], 128  }
   0xd   :  { %471 = vsyncadd [#allocation4], 4294967168  ;;  %v475_v0 = vmov 0.0   ;;  %vm476_vm0 = vmmov 0   ;;  %v477_v1 = vmov 0   ;;  %vm65_vm1 = vcmask 261120  }
   0xe   :  { %401 = vmatprep.subr.mxu0 %v475_v0  ;;  %406 = vmatprep.subr.mxu1 %v475_v0  ;;  %v59_v2 = vld [vmem:[#allocation3] sm:$0xff]  ;;  %v319_v20 = vstv %s577_s0  ;;  %vm356_vm2 = vcmask 64512   ;;  %vm52_vm3 = vcmask 0   ;;  %s478_s0 = smov [#allocation6]  }
   0xf   :  { %403 = vmatprep.mubr.msk.f32.mxu0 %vm476_vm0, %v475_v0  ;;  %408 = vmatprep.mubr.msk.f32.mxu1 %vm476_vm0, %v475_v0  ;;  %v60_v3 = vld [vmem:[%s581_s4] sm:$0xff]  ;;  %53 = vst.msk [vmem:[#allocation6] sm:$0x1] %vm52_vm3, %v475_v0 }
  0x10   :  { %423 = vset.pattern.permute.xlu0 %v477_v1  ;;  %v55_v4 = vld [vmem:[%s578_s1] sm:$0xff]  ;;  %402 = vmatpush3.xpose.msk.msra.mxu0 %vm65_vm1, %v59_v2 }
  0x11   :  { %407 = vmatpush3.xpose.msk.msra.mxu1 %vm65_vm1, %v60_v3  ;;  %v56_v5 = vmul.f32 -2.0, %v55_v4  ;;  %v57_v6 = vld [vmem:[%s579_s2] sm:$0xff]  ;;  %411 = vmatprep.subr.mxu0 %v475_v0 }
  0x12   :  { %v61_v7 = vld [vmem:[%s582_s5] sm:$0xff]  ;;  %v58_v8 = vmul.f32 -2.0, %v57_v6 }
  0x13   :  { %290 = vperm.xlu0 %423, %v61_v7   ;;  %v62_v9 = vld [vmem:[%s583_s6] sm:$0xff]  ;;  %404 = vmatmul.mubr.msk.f32.vlgmr.msra.gmra.mxu0 %vm65_vm1, %v56_v5 }
  0x14   :  { %409 = vmatmul.mubr.msk.f32.vlgmr.msra.gmra.mxu1 %vm65_vm1, %v58_v8  ;;  %412 = vmatpush3.xpose.msk.msra.mxu0 %vm65_vm1, %v60_v3  ;;  %v393_v11 = vld [vmem:[%s584_s7] ss:$0 sm:$0xff]  ;;  %s378_s7 = sshll.u32 %s478_s0, 4  ;;  %s379_s7 = int_to_ptr.vmem [resolvable:$true] %s378_s7 }
  0x15   :  { %413 = vmatprep.mubr.msk.f32.mxu0 %vm476_vm0, %v475_v0  ;;  %v394_v12 = vld [vmem:[%s585_s8] ss:$0 sm:$0xff]  ;;  %s450_s24 = scalar_lea.vmem %s379_s7, 16  ;;  %s454_s25 = scalar_lea.vmem %s379_s7, 32 }
  0x16   :  { %p451_p5 = scmp.ne.s32.totalorder %s379_s7, %s450_s24  ;;  %p455_p6 = scmp.lt.s32.totalorder %s379_s7, %s379_s7 }
  0x17   :  { %304 = vperm.xlu0 %423, %v62_v9   ;;  %414 = vmatmul.mubr.msk.f32.vlgmr.msra.gmra.mxu0 %vm65_vm1, %v56_v5  ;;  %p456_p7 = scmp.lt.s32.totalorder %s454_s25, %s450_s24 }
  0x19   :  { %p457_p8 = por %p456_p7, %p455_p6 }
  0x1b   :  { %p458_p9 = pnand %p457_p8, %p451_p5 }
  0x8e   :  { %v291_v10 = vpop.permute.xlu0 %290 }
  0x8f   :  { %v299_v14 = vadd.f32 %v393_v11, %v291_v10  ;;  %v316_v25 = vadd.f32 %v394_v12, %v291_v10  ;;  %v368_v11 = vld [vmem:[#allocation6] sm:$0x1] }
  0x92   :  { %v305_v13 = vpop.permute.xlu0 %304 }
  0x93   :  { %v313_v15 = vadd.f32 %v394_v12, %v305_v13 }
  0xd3   :  { %v138_v16 = vpop.f32.mrf.mxu0 }
  0xd4   :  { %v214_v17 = vpop.f32.mrf.mxu1  ;;  %v300_v18 = vadd.f32 %v299_v14, %v138_v16 }
  0xd5   :  { %v314_v19 = vadd.f32 %v313_v15, %v214_v17  ;;  %v405_v21 = vpop.f32.mrf.mxu0 }
  0xd6   :  { %v410_v22 = vpop.f32.mrf.mxu1  ;;  %v301_v23 = vmax.f32 %v300_v18, 0.0 }
  0xd7   :  { %v315_v24 = vmax.f32 %v314_v19, 0.0  ;;  %v284_v26 = vpop.f32.mrf.mxu0 }
  0xd8   :  { %v320_v27 = vmul.f32 %v319_v20, %v301_v23  ;;  %v317_v29 = vadd.f32 %v316_v25, %v284_v26 }
  0xd9   :  { %v331_v28 = vmul.f32 %v319_v20, %v315_v24  ;;  %v415_v30 = vpop.f32.mrf.mxu0 }
  0xda   :  { %v321_v31 = vmul.f32 1.442695, %v320_v27  ;;  %v318_v33 = vmax.f32 %v317_v29, 0.0 }
  0xdb   :  { %v332_v32 = vmul.f32 1.442695, %v331_v28 }
  0xdc   :  { %424 = vpow2.f32 %v321_v31  ;;  %v342_v34 = vmul.f32 %v319_v20, %v318_v33 }
  0xdd   :  { %426 = vpow2.f32 %v332_v32 }
  0xde   :  { %v343_v35 = vmul.f32 1.442695, %v342_v34 }
  0xe0   :  { %428 = vpow2.f32 %v343_v35 }
  0xe9   :  { %v425_v36 = vpop.eup %424 }
  0xea   :  { %v427_v37 = vpop.eup %426  ;;  %v323_v38 = vmul.f32 %v425_v36, %v425_v36 }
  0xeb   :  { %v334_v39 = vmul.f32 %v427_v37, %v427_v37 }
  0xec   :  { %v324_v40 = vadd.f32 %v425_v36, %v323_v38  ;;  %v325_v41 = vmul.f32 %v323_v38, %v323_v38 }
  0xed   :  { %v429_v42 = vpop.eup %428  ;;  %v335_v43 = vadd.f32 %v427_v37, %v334_v39  ;;  %v336_v44 = vmul.f32 %v334_v39, %v334_v39 }
  0xee   :  { %v326_v45 = vadd.f32 %v325_v41, %v324_v40  ;;  %v327_v46 = vmul.f32 %v325_v41, %v325_v41  ;;  %v345_v47 = vmul.f32 %v429_v42, %v429_v42 }
  0xef   :  { %v337_v48 = vadd.f32 %v336_v44, %v335_v43  ;;  %v338_v49 = vmul.f32 %v336_v44, %v336_v44 }
  0xf0   :  { %v328_v50 = vadd.f32 %v327_v46, %v326_v45  ;;  %v329_v51 = vmul.f32 %v327_v46, %v327_v46  ;;  %v346_v52 = vadd.f32 %v429_v42, %v345_v47  ;;  %v347_v53 = vmul.f32 %v345_v47, %v345_v47 }
  0xf1   :  { %v339_v54 = vadd.f32 %v338_v49, %v337_v48  ;;  %v340_v55 = vmul.f32 %v338_v49, %v338_v49 }
  0xf2   :  { %v348_v56 = vadd.f32 %v347_v53, %v346_v52  ;;  %v349_v57 = vmul.f32 %v347_v53, %v347_v53  ;;  %v330_v58 = vadd.f32 %v329_v51, %v328_v50 }
  0xf3   :  { %v341_v59 = vadd.f32 %v340_v55, %v339_v54 }
  0xf4   :  { %v350_v60 = vadd.f32 %v349_v57, %v348_v56  ;;  %v351_v61 = vmul.f32 %v349_v57, %v349_v57 }
  0xf5   :  { %v353_v63 = vadd.f32 %v341_v59, %v330_v58 }
  0xf6   :  { %v352_v62 = vadd.f32 %v351_v61, %v350_v60 }
  0xf8   :  { %v354_v1 = vmul.f32 2.0, %v352_v62 }
  0xfa   :  { %v355_v2 = vsub.f32 %v353_v63, %v354_v1 }
  0xfc   :  { %v357_v3 = vsel %vm356_vm2, %v355_v2, 0.0 }
  0xfd   :  { %358 = vadd.xlane.f32.xlu1 %v357_v3 }
 0x186   :  { %v359_v4 = vpop.xlane.xlu1 %358 }
 0x187   :  { %v360_v5 = vrot.slane %v359_v4, 4 }
 0x189   :  { %v361_v6 = vadd.f32 %v360_v5, %v359_v4 }
 0x18b   :  { %v362_v7 = vrot.slane %v361_v6, 2 }
 0x18d   :  { %v363_v8 = vadd.f32 %v362_v7, %v361_v6 }
 0x18f   :  { %v364_v9 = vrot.slane %v363_v8, 1 }
 0x191   :  { %v365_v10 = vadd.f32 %v364_v9, %v363_v8 }
 0x193   :  { %416 = vpush %v365_v10 }
 0x1c4   :  { %s417_s8 = spop %416 }
 0x1c5   :  { %v367_v12 = vstv %s417_s8 }
 0x1c6   :  { %v369_v13 = vadd.f32 %v368_v11, %v367_v12 }
 0x1c8   :  { %371 = vst.msk [vmem:[#allocation6] sm:$0x1] %vm52_vm3, %v369_v13 }
 0x1c9   :  { %461 = shalt.err (!%p458_p9)
}
 0x1ca   :  { %381 = dma.vmem_to_hbm [thread:$0]  %s379_s7, 16, %s586_s9, [#allocation5]  }
 0x1cb   :  { %472 = dma.done.wait [#allocation5], 16  }
 0x1cc   :  { %473 = vsyncadd [#allocation5], 4294967280 }
 0x1cd   :  { %385 = vsyncpa [#allocation4], 1 }
 0x1ce   :  { %386 = vsyncpa [#allocation5], 1 }

</bundles_post_ra>
